<compile_context>
chip_gen: v5e
topology: v5e:2x2
jax: 0.10.0
libtpu: 0.0.40
codegen_flags: <defaults>
</compile_context>

<pallas_src>
import functools

import numpy as np
import jax
import jax.numpy as jnp
from jax.experimental import pallas as pl
from jax.experimental.pallas import tpu as pltpu


def _sepconv_bn_kernel(x_ref, dw_ref, pw_ref, shift_ref, o_ref, *,
                       k, w_pad, n_out, use_mxu):
    """One grid step = `tb` images stacked along the sublane axis.

    x_ref     : [1, tb*C_in, n_in]    zero-padded planes, flattened row-major on lanes
    dw_ref    : [tb*C_in, k*k]        depthwise taps (tap t = dy*k + dx), tiled per image
    pw_ref    : [tb*C_out, tb*C_in]   block-diagonal pointwise weights, BN scale folded in
    shift_ref : [tb*C_out, 1]         folded BN shift
    o_ref     : [1, tb*C_out, n_out]  lane-dense output (rows 0..H-1 of each plane only)
    """
    xv = x_ref[0].astype(jnp.float32)                        # [R_in, n_in]

    # ---- depthwise k x k conv ('same' padding, stride 1) ---------------------
    # One lane-slab slice per dy row; the dx taps are derived with XLU rolls so the
    # shift work co-issues with the VPU MACs. Rolled-around lanes only land in output
    # positions that are discarded host-side (odd k, padding=k//2 invariant).
    d = None
    for dy in range(k):
        row = xv[:, dy * w_pad: dy * w_pad + n_out]          # [R_in, n_out]
        for dx in range(k):
            tap = row if dx == 0 else pltpu.roll(row, shift=n_out - dx, axis=1)
            t = dy * k + dx
            term = dw_ref[:, t:t + 1] * tap
            d = term if d is None else d + term              # [R_in, n_out]

    # ---- pointwise 1x1 conv (BN scale already folded into the weights) -------
    if use_mxu:
        # Single MXU matmul over the (block-diagonal) channel contraction.
        # TODO(synk): use precision=HIGHEST if bit-exact f32 parity is required.
        y = jnp.dot(pw_ref[...], d, preferred_element_type=jnp.float32)
    else:
        # Exact-f32 VPU outer-product fallback for tiny channel counts (C_in < 8).
        r_in = d.shape[0]
        y = pw_ref[:, 0:1] * d[0:1, :]
        for ci in range(1, r_in):
            y = y + pw_ref[:, ci:ci + 1] * d[ci:ci + 1, :]   # [R_out, n_out]

    # ---- BatchNorm2d (inference): add folded shift ----------------------------
    o_ref[0] = (y + shift_ref[:, 0:1]).astype(o_ref.dtype)


def separable_conv2d_bn(x, dw_weight, pw_weight, bn_gamma, bn_beta,
                        bn_running_mean, bn_running_var, *, eps=1e-3,
                        images_per_step=None, act_dtype=jnp.float32,
                        use_mxu=None):
    """SeparableConv2dBN forward (bias-free separable conv + BatchNorm2d, eval mode).

    x          : [B, C_in, H, W]      (NCHW, like torch)
    dw_weight  : [C_in, 1, k, k]      depthwise conv weight (groups=C_in)
    pw_weight  : [C_out, C_in, 1, 1]  pointwise conv weight
    bn_*       : [C_out]              BatchNorm2d parameters / running stats
    act_dtype  : dtype for the activation slabs (bf16 halves HBM traffic on v6e/v7x)
    """
    orig_dtype = x.dtype
    B, C_in, H, W = map(int, x.shape)
    C_out = int(pw_weight.shape[0])
    k = int(dw_weight.shape[-1])
    assert int(dw_weight.shape[-2]) == k and k % 2 == 1, \
        "odd square depthwise kernel required (even k changes torch's output size)"
    p = k // 2
    H_pad, W_pad = H + 2 * p, W + 2 * p
    flat = H_pad * W_pad                              # one padded plane, flattened
    # Only the H valid output rows are computed; pad lanes up to a multiple of 128
    # so stores are unmasked lane-dense `vst`s.
    n_out = ((H * W_pad + 127) // 128) * 128
    n_in = (k - 1) * W_pad + n_out                    # covers the furthest depthwise tap
    assert n_in >= flat                               # whole padded plane fits the slab

    dt_bytes = jnp.dtype(act_dtype).itemsize
    # Fill the 8 f32 sublanes at tiny channel counts by stacking images.
    tb_min = 1 if C_in >= 8 else -(-8 // C_in)
    if use_mxu is None:
        use_mxu = C_in >= 8                           # MXU pointwise at real widths only

    # ---- images per grid step --------------------------------------------------
    if images_per_step is None:
        per_img_bytes = dt_bytes * 2 * (C_in * n_in + C_out * n_out)  # dbl-buffered in+out
        cap_vmem = max(tb_min, (16 << 20) // max(per_img_bytes, 1))   # stay well in VMEM
        cap_sub = max(1, 64 // C_in) if C_in >= 8 else tb_min         # bound sublane extent
        tb = min(max(B, tb_min), cap_vmem, cap_sub)
        tb = max(tb_min, (tb // tb_min) * tb_min)
    else:
        tb = max(1, int(images_per_step))
    nb = -(-B // tb)
    if nb > 1 and nb % 2 == 1:                        # even #steps -> v7x 2 TCs split evenly
        for t in range(tb - tb_min, 0, -tb_min):
            if -(-B // t) % 2 == 0:
                tb = t
                nb = -(-B // t)
                break
    B_pad = nb * tb                                   # pad awkward batch sizes, never tb=1 cliff

    # ---- host-side encode: pad (batch + spatial), flatten, stack on sublanes ---
    x_sp = jnp.pad(x.astype(act_dtype), ((0, B_pad - B), (0, 0), (p, p), (p, p)))
    x_g = x_sp.reshape(B_pad, C_in, flat).reshape(nb, tb * C_in, flat)
    x_g = jnp.pad(x_g, ((0, 0), (0, 0), (0, n_in - flat)))          # [nb, tb*C_in, n_in]

    # ---- fold BatchNorm into the pointwise weights ------------------------------
    scale = bn_gamma.astype(jnp.float32) * jax.lax.rsqrt(
        bn_running_var.astype(jnp.float32) + jnp.float32(eps))
    shift = bn_beta.astype(jnp.float32) - bn_running_mean.astype(jnp.float32) * scale

    dw2 = dw_weight.astype(jnp.float32).reshape(C_in, k * k)
    dw_k = jnp.tile(dw2, (tb, 1))                                   # [tb*C_in, k*k]

    pw2 = pw_weight.astype(jnp.float32).reshape(C_out, C_in) * scale[:, None]
    eye = jnp.eye(tb, dtype=jnp.float32)
    pw_k = jnp.einsum("gh,oc->gohc", eye, pw2).reshape(tb * C_out, tb * C_in)
    shift_k = jnp.tile(shift, (tb,))[:, None]                       # [tb*C_out, 1]

    R_in, R_out = tb * C_in, tb * C_out
    kernel = functools.partial(_sepconv_bn_kernel, k=k, w_pad=W_pad,
                               n_out=n_out, use_mxu=bool(use_mxu))

    out = pl.pallas_call(
        kernel,
        grid=(nb,),
        in_specs=[
            pl.BlockSpec((1, R_in, n_in), lambda b: (b, 0, 0)),
            pl.BlockSpec((R_in, k * k), lambda b: (0, 0)),
            pl.BlockSpec((R_out, R_in), lambda b: (0, 0)),
            pl.BlockSpec((R_out, 1), lambda b: (0, 0)),
        ],
        out_specs=pl.BlockSpec((1, R_out, n_out), lambda b: (b, 0, 0)),
        out_shape=jax.ShapeDtypeStruct((nb, R_out, n_out), act_dtype),
        compiler_params=pltpu.CompilerParams(
            dimension_semantics=("parallel",),       # independent per image group
            vmem_limit_bytes=48 * 1024 * 1024),
    )(x_g, dw_k, pw_k, shift_k)

    # ---- host-side decode: drop pad columns / pad images, back to NCHW ----------
    y = out[:, :, :H * W_pad].reshape(B_pad, C_out, H, W_pad)[:B, :, :, :W]
    return y.astype(orig_dtype)


def reference_np(x, dw_w, pw_w, gamma, beta, mean, var, eps):
    """Pure numpy re-implementation of the PyTorch module (eval-mode BN)."""
    B, C_in, H, W = x.shape
    k = dw_w.shape[-1]
    p = k // 2
    xp = np.pad(x, ((0, 0), (0, 0), (p, p), (p, p)))
    dwo = np.zeros((B, C_in, H, W), np.float32)
    for dy in range(k):
        for dx in range(k):
            wtap = dw_w[:, 0, dy, dx][None, :, None, None]
            dwo += wtap * xp[:, :, dy:dy + H, dx:dx + W]
    y = np.einsum("oc,bchw->bohw", pw_w[:, :, 0, 0], dwo)
    y = (y - mean[None, :, None, None]) / np.sqrt(var + eps)[None, :, None, None]
    y = y * gamma[None, :, None, None] + beta[None, :, None, None]
    return y.astype(np.float32)


if __name__ == "__main__":
    def _run_case(name, B, C_in, C_out, H, W, k, rtol, atol, seed):
        eps = 1e-3
        key = jax.random.PRNGKey(seed)
        ks = jax.random.split(key, 7)
        x = jax.random.normal(ks[0], (B, C_in, H, W), jnp.float32)
        dw_w = 0.3 * jax.random.normal(ks[1], (C_in, 1, k, k), jnp.float32)
        pw_w = 0.3 * jax.random.normal(ks[2], (C_out, C_in, 1, 1), jnp.float32)
        gamma = jax.random.uniform(ks[3], (C_out,), jnp.float32, 0.5, 1.5)
        beta = 0.1 * jax.random.normal(ks[4], (C_out,), jnp.float32)
        r_mean = 0.1 * jax.random.normal(ks[5], (C_out,), jnp.float32)
        r_var = jax.random.uniform(ks[6], (C_out,), jnp.float32, 0.5, 1.5)

        fwd = jax.jit(functools.partial(separable_conv2d_bn, eps=eps))
        y = fwd(x, dw_w, pw_w, gamma, beta, r_mean, r_var)
        jax.block_until_ready(y)

        y_ref = reference_np(np.asarray(x), np.asarray(dw_w), np.asarray(pw_w),
                             np.asarray(gamma), np.asarray(beta),
                             np.asarray(r_mean), np.asarray(r_var), eps)
        assert y.shape == (B, C_out, H, W), (name, y.shape)
        np.testing.assert_allclose(np.asarray(y), y_ref, rtol=rtol, atol=atol,
                                   err_msg=name)

    # Toy config: exercises the exact-f32 VPU pointwise fallback + sublane stacking.
    _run_case("small", B=2, C_in=4, C_out=8, H=16, W=16, k=3,
              rtol=1e-4, atol=1e-4, seed=0)
    # Wider config: exercises the MXU pointwise path, k=5 taps, batch padding (B=5 -> 8)
    # and a multi-step grid; tolerance allows the MXU's default matmul precision.
    _run_case("wide", B=5, C_in=16, C_out=32, H=12, W=12, k=5,
              rtol=3e-2, atol=3e-2, seed=1)

    print("KERNEL_OK")
</pallas_src>

<mosaic_0001>
module attributes {stable_mosaic.version = 11 : i64} {
  func.func @_sepconv_bn_kernel(%arg0: i32, %arg1: memref<1x8x420xf32, #tpu.memory_space<vmem>>, %arg2: memref<8x9xf32, #tpu.memory_space<vmem>>, %arg3: memref<16x8xf32, #tpu.memory_space<vmem>>, %arg4: memref<16x1xf32, #tpu.memory_space<vmem>>, %arg5: memref<1x16x384xf32, #tpu.memory_space<vmem>>) attributes {dimension_semantics = [#tpu.dimension_semantics<parallel>], iteration_bounds = array<i64: 1>, scalar_prefetch = 0 : i64, scratch_operands = 0 : i64, tpu.core_type = #tpu.core_type<tc>, window_params = [{transform_indices = @transform_0, window_bounds = array<i64: 1, 8, 420>}, {pipeline_mode = #tpu.pipeline_mode<synchronous>, transform_indices = @transform_1, window_bounds = array<i64: 8, 9>}, {pipeline_mode = #tpu.pipeline_mode<synchronous>, transform_indices = @transform_2, window_bounds = array<i64: 16, 8>}, {pipeline_mode = #tpu.pipeline_mode<synchronous>, transform_indices = @transform_3, window_bounds = array<i64: 16, 1>}, {transform_indices = @transform_4, window_bounds = array<i64: 1, 16, 384>}]} {
    %c0 = arith.constant 0 : index
    %c0_0 = arith.constant 0 : index
    %c0_1 = arith.constant 0 : index
    %0 = vector.load %arg1[%c0, %c0_0, %c0_1] : memref<1x8x420xf32, #tpu.memory_space<vmem>>, vector<1x8x420xf32>
    %1 = vector.shape_cast %0 : vector<1x8x420xf32> to vector<8x420xf32>
    %2 = vector.extract_strided_slice %1 {offsets = [0, 0], sizes = [8, 384], strides = [1, 1]} : vector<8x420xf32> to vector<8x384xf32>
    %c0_2 = arith.constant 0 : index
    %c0_3 = arith.constant 0 : index
    %3 = vector.load %arg2[%c0_2, %c0_3] : memref<8x9xf32, #tpu.memory_space<vmem>>, vector<8x1xf32>
    %4 = vector.broadcast %3 : vector<8x1xf32> to vector<8x384xf32>
    %5 = arith.mulf %4, %2 : vector<8x384xf32>
    %c383_i32 = arith.constant 383 : i32
    %6 = tpu.dynamic_rotate %2 by %c383_i32 dim 1 : vector<8x384xf32>, i32 -> vector<8x384xf32>
    %c0_4 = arith.constant 0 : index
    %c1 = arith.constant 1 : index
    %7 = vector.load %arg2[%c0_4, %c1] : memref<8x9xf32, #tpu.memory_space<vmem>>, vector<8x1xf32>
    %8 = vector.broadcast %7 : vector<8x1xf32> to vector<8x384xf32>
    %9 = arith.mulf %8, %6 : vector<8x384xf32>
    %10 = arith.addf %5, %9 : vector<8x384xf32>
    %c382_i32 = arith.constant 382 : i32
    %11 = tpu.dynamic_rotate %2 by %c382_i32 dim 1 : vector<8x384xf32>, i32 -> vector<8x384xf32>
    %c0_5 = arith.constant 0 : index
    %c2 = arith.constant 2 : index
    %12 = vector.load %arg2[%c0_5, %c2] : memref<8x9xf32, #tpu.memory_space<vmem>>, vector<8x1xf32>
    %13 = vector.broadcast %12 : vector<8x1xf32> to vector<8x384xf32>
    %14 = arith.mulf %13, %11 : vector<8x384xf32>
    %15 = arith.addf %10, %14 : vector<8x384xf32>
    %16 = vector.extract_strided_slice %1 {offsets = [0, 18], sizes = [8, 384], strides = [1, 1]} : vector<8x420xf32> to vector<8x384xf32>
    %c0_6 = arith.constant 0 : index
    %c3 = arith.constant 3 : index
    %17 = vector.load %arg2[%c0_6, %c3] : memref<8x9xf32, #tpu.memory_space<vmem>>, vector<8x1xf32>
    %18 = vector.broadcast %17 : vector<8x1xf32> to vector<8x384xf32>
    %19 = arith.mulf %18, %16 : vector<8x384xf32>
    %20 = arith.addf %15, %19 : vector<8x384xf32>
    %c383_i32_7 = arith.constant 383 : i32
    %21 = tpu.dynamic_rotate %16 by %c383_i32_7 dim 1 : vector<8x384xf32>, i32 -> vector<8x384xf32>
    %c0_8 = arith.constant 0 : index
    %c4 = arith.constant 4 : index
    %22 = vector.load %arg2[%c0_8, %c4] : memref<8x9xf32, #tpu.memory_space<vmem>>, vector<8x1xf32>
    %23 = vector.broadcast %22 : vector<8x1xf32> to vector<8x384xf32>
    %24 = arith.mulf %23, %21 : vector<8x384xf32>
    %25 = arith.addf %20, %24 : vector<8x384xf32>
    %c382_i32_9 = arith.constant 382 : i32
    %26 = tpu.dynamic_rotate %16 by %c382_i32_9 dim 1 : vector<8x384xf32>, i32 -> vector<8x384xf32>
    %c0_10 = arith.constant 0 : index
    %c5 = arith.constant 5 : index
    %27 = vector.load %arg2[%c0_10, %c5] : memref<8x9xf32, #tpu.memory_space<vmem>>, vector<8x1xf32>
    %28 = vector.broadcast %27 : vector<8x1xf32> to vector<8x384xf32>
    %29 = arith.mulf %28, %26 : vector<8x384xf32>
    %30 = arith.addf %25, %29 : vector<8x384xf32>
    %31 = vector.extract_strided_slice %1 {offsets = [0, 36], sizes = [8, 384], strides = [1, 1]} : vector<8x420xf32> to vector<8x384xf32>
    %c0_11 = arith.constant 0 : index
    %c6 = arith.constant 6 : index
    %32 = vector.load %arg2[%c0_11, %c6] : memref<8x9xf32, #tpu.memory_space<vmem>>, vector<8x1xf32>
    %33 = vector.broadcast %32 : vector<8x1xf32> to vector<8x384xf32>
    %34 = arith.mulf %33, %31 : vector<8x384xf32>
    %35 = arith.addf %30, %34 : vector<8x384xf32>
    %c383_i32_12 = arith.constant 383 : i32
    %36 = tpu.dynamic_rotate %31 by %c383_i32_12 dim 1 : vector<8x384xf32>, i32 -> vector<8x384xf32>
    %c0_13 = arith.constant 0 : index
    %c7 = arith.constant 7 : index
    %37 = vector.load %arg2[%c0_13, %c7] : memref<8x9xf32, #tpu.memory_space<vmem>>, vector<8x1xf32>
    %38 = vector.broadcast %37 : vector<8x1xf32> to vector<8x384xf32>
    %39 = arith.mulf %38, %36 : vector<8x384xf32>
    %40 = arith.addf %35, %39 : vector<8x384xf32>
    %c382_i32_14 = arith.constant 382 : i32
    %41 = tpu.dynamic_rotate %31 by %c382_i32_14 dim 1 : vector<8x384xf32>, i32 -> vector<8x384xf32>
    %c0_15 = arith.constant 0 : index
    %c8 = arith.constant 8 : index
    %42 = vector.load %arg2[%c0_15, %c8] : memref<8x9xf32, #tpu.memory_space<vmem>>, vector<8x1xf32>
    %43 = vector.broadcast %42 : vector<8x1xf32> to vector<8x384xf32>
    %44 = arith.mulf %43, %41 : vector<8x384xf32>
    %45 = arith.addf %40, %44 : vector<8x384xf32>
    %c0_16 = arith.constant 0 : index
    %c0_17 = arith.constant 0 : index
    %46 = vector.load %arg3[%c0_16, %c0_17] : memref<16x8xf32, #tpu.memory_space<vmem>>, vector<16x1xf32>
    %47 = vector.extract_strided_slice %45 {offsets = [0, 0], sizes = [1, 384], strides = [1, 1]} : vector<8x384xf32> to vector<1x384xf32>
    %48 = vector.broadcast %46 : vector<16x1xf32> to vector<16x384xf32>
    %49 = vector.broadcast %47 : vector<1x384xf32> to vector<16x384xf32>
    %50 = arith.mulf %48, %49 : vector<16x384xf32>
    %c0_18 = arith.constant 0 : index
    %c1_19 = arith.constant 1 : index
    %51 = vector.load %arg3[%c0_18, %c1_19] : memref<16x8xf32, #tpu.memory_space<vmem>>, vector<16x1xf32>
    %52 = vector.extract_strided_slice %45 {offsets = [1, 0], sizes = [1, 384], strides = [1, 1]} : vector<8x384xf32> to vector<1x384xf32>
    %53 = vector.broadcast %51 : vector<16x1xf32> to vector<16x384xf32>
    %54 = vector.broadcast %52 : vector<1x384xf32> to vector<16x384xf32>
    %55 = arith.mulf %53, %54 : vector<16x384xf32>
    %56 = arith.addf %50, %55 : vector<16x384xf32>
    %c0_20 = arith.constant 0 : index
    %c2_21 = arith.constant 2 : index
    %57 = vector.load %arg3[%c0_20, %c2_21] : memref<16x8xf32, #tpu.memory_space<vmem>>, vector<16x1xf32>
    %58 = vector.extract_strided_slice %45 {offsets = [2, 0], sizes = [1, 384], strides = [1, 1]} : vector<8x384xf32> to vector<1x384xf32>
    %59 = vector.broadcast %57 : vector<16x1xf32> to vector<16x384xf32>
    %60 = vector.broadcast %58 : vector<1x384xf32> to vector<16x384xf32>
    %61 = arith.mulf %59, %60 : vector<16x384xf32>
    %62 = arith.addf %56, %61 : vector<16x384xf32>
    %c0_22 = arith.constant 0 : index
    %c3_23 = arith.constant 3 : index
    %63 = vector.load %arg3[%c0_22, %c3_23] : memref<16x8xf32, #tpu.memory_space<vmem>>, vector<16x1xf32>
    %64 = vector.extract_strided_slice %45 {offsets = [3, 0], sizes = [1, 384], strides = [1, 1]} : vector<8x384xf32> to vector<1x384xf32>
    %65 = vector.broadcast %63 : vector<16x1xf32> to vector<16x384xf32>
    %66 = vector.broadcast %64 : vector<1x384xf32> to vector<16x384xf32>
    %67 = arith.mulf %65, %66 : vector<16x384xf32>
    %68 = arith.addf %62, %67 : vector<16x384xf32>
    %c0_24 = arith.constant 0 : index
    %c4_25 = arith.constant 4 : index
    %69 = vector.load %arg3[%c0_24, %c4_25] : memref<16x8xf32, #tpu.memory_space<vmem>>, vector<16x1xf32>
    %70 = vector.extract_strided_slice %45 {offsets = [4, 0], sizes = [1, 384], strides = [1, 1]} : vector<8x384xf32> to vector<1x384xf32>
    %71 = vector.broadcast %69 : vector<16x1xf32> to vector<16x384xf32>
    %72 = vector.broadcast %70 : vector<1x384xf32> to vector<16x384xf32>
    %73 = arith.mulf %71, %72 : vector<16x384xf32>
    %74 = arith.addf %68, %73 : vector<16x384xf32>
    %c0_26 = arith.constant 0 : index
    %c5_27 = arith.constant 5 : index
    %75 = vector.load %arg3[%c0_26, %c5_27] : memref<16x8xf32, #tpu.memory_space<vmem>>, vector<16x1xf32>
    %76 = vector.extract_strided_slice %45 {offsets = [5, 0], sizes = [1, 384], strides = [1, 1]} : vector<8x384xf32> to vector<1x384xf32>
    %77 = vector.broadcast %75 : vector<16x1xf32> to vector<16x384xf32>
    %78 = vector.broadcast %76 : vector<1x384xf32> to vector<16x384xf32>
    %79 = arith.mulf %77, %78 : vector<16x384xf32>
    %80 = arith.addf %74, %79 : vector<16x384xf32>
    %c0_28 = arith.constant 0 : index
    %c6_29 = arith.constant 6 : index
    %81 = vector.load %arg3[%c0_28, %c6_29] : memref<16x8xf32, #tpu.memory_space<vmem>>, vector<16x1xf32>
    %82 = vector.extract_strided_slice %45 {offsets = [6, 0], sizes = [1, 384], strides = [1, 1]} : vector<8x384xf32> to vector<1x384xf32>
    %83 = vector.broadcast %81 : vector<16x1xf32> to vector<16x384xf32>
    %84 = vector.broadcast %82 : vector<1x384xf32> to vector<16x384xf32>
    %85 = arith.mulf %83, %84 : vector<16x384xf32>
    %86 = arith.addf %80, %85 : vector<16x384xf32>
    %c0_30 = arith.constant 0 : index
    %c7_31 = arith.constant 7 : index
    %87 = vector.load %arg3[%c0_30, %c7_31] : memref<16x8xf32, #tpu.memory_space<vmem>>, vector<16x1xf32>
    %88 = vector.extract_strided_slice %45 {offsets = [7, 0], sizes = [1, 384], strides = [1, 1]} : vector<8x384xf32> to vector<1x384xf32>
    %89 = vector.broadcast %87 : vector<16x1xf32> to vector<16x384xf32>
    %90 = vector.broadcast %88 : vector<1x384xf32> to vector<16x384xf32>
    %91 = arith.mulf %89, %90 : vector<16x384xf32>
    %92 = arith.addf %86, %91 : vector<16x384xf32>
    %c0_32 = arith.constant 0 : index
    %c0_33 = arith.constant 0 : index
    %93 = vector.load %arg4[%c0_32, %c0_33] : memref<16x1xf32, #tpu.memory_space<vmem>>, vector<16x1xf32>
    %94 = vector.broadcast %93 : vector<16x1xf32> to vector<16x384xf32>
    %95 = arith.addf %92, %94 : vector<16x384xf32>
    %c0_34 = arith.constant 0 : index
    %c0_35 = arith.constant 0 : index
    %c0_36 = arith.constant 0 : index
    %96 = vector.load %arg5[%c0_34, %c0_35, %c0_36] : memref<1x16x384xf32, #tpu.memory_space<vmem>>, vector<1x16x384xf32>
    %97 = vector.shape_cast %96 : vector<1x16x384xf32> to vector<16x384xf32>
    %98 = vector.shape_cast %95 : vector<16x384xf32> to vector<1x16x384xf32>
    tpu.vector_store %arg5[%c0_34, %c0_35, %c0_36], %98 {strides = array<i32>} : memref<1x16x384xf32, #tpu.memory_space<vmem>>, vector<1x16x384xf32>,
    return
  }
  func.func @transform_0(%arg0: i32) -> (i32, i32, i32) {
    %c0_i32 = arith.constant 0 : i32
    %c0_i32_0 = arith.constant 0 : i32
    %c0_i32_1 = arith.constant 0 : i32
    return %arg0, %c0_i32, %c0_i32_0 : i32, i32, i32
  }
  func.func @transform_1(%arg0: i32) -> (i32, i32) {
    %c0_i32 = arith.constant 0 : i32
    %c0_i32_0 = arith.constant 0 : i32
    %c0_i32_1 = arith.constant 0 : i32
    return %c0_i32, %c0_i32_0 : i32, i32
  }
  func.func @transform_2(%arg0: i32) -> (i32, i32) {
    %c0_i32 = arith.constant 0 : i32
    %c0_i32_0 = arith.constant 0 : i32
    %c0_i32_1 = arith.constant 0 : i32
    return %c0_i32, %c0_i32_0 : i32, i32
  }
  func.func @transform_3(%arg0: i32) -> (i32, i32) {
    %c0_i32 = arith.constant 0 : i32
    %c0_i32_0 = arith.constant 0 : i32
    %c0_i32_1 = arith.constant 0 : i32
    return %c0_i32, %c0_i32_0 : i32, i32
  }
  func.func @transform_4(%arg0: i32) -> (i32, i32, i32) {
    %c0_i32 = arith.constant 0 : i32
    %c0_i32_0 = arith.constant 0 : i32
    %c0_i32_1 = arith.constant 0 : i32
    return %arg0, %c0_i32, %c0_i32_0 : i32, i32, i32
  }
}

</mosaic_0001>

<bundles_post_ra>
// kernel: tile.16
= control target key start
LH: loop header
LB: loop body
LE: loop exit
PB: predicated region body
PF: predicated region fallthrough
CT: control target
= control target key end

     0   :  { %s22_s0 = inlined_call_operand.vmem [shape: f32[8], index: 0, kind: input, shape index: {}]   ;;  %s23_s1 = inlined_call_operand.vmem [shape: f32[2,8], index: 1, kind: output, shape index: {}]  }
   0x1   :  { %v4_v0 = vld [vmem:[%s22_s0] ss:$0 sm:$0xff] }
   0x2   :  { %5 = vst [vmem:[%s23_s1] sm:$0x3] %v4_v0 }

// kernel: tile.0
= control target key start
LH: loop header
LB: loop body
LE: loop exit
PB: predicated region body
PF: predicated region fallthrough
CT: control target
= control target key end

     0   :  { %s66_s8 = smov 125   ;;  %s67_s9 = smov 123   ;;  %vm7_vm0 = vcmask 7168   ;;  %s117_s0 = inlined_call_operand.vmem [shape: f32[2,8], index: 0, kind: input, shape index: {}]   ;;  %s118_s1 = inlined_call_operand.vmem [shape: f32[16,1], index: 1, kind: output, shape index: {}]  }
   0x1   :  { %v4_v0 = vld [vmem:[%s117_s0] sm:$0x3]  ;;  %s65_s0 = smov 127   ;;  %s68_s10 = smov 126  }
   0x2   :  { %5 = vst [vmem:[#allocation0] sm:$0x3] %v4_v0  ;;  %s69_s11 = smov 124   ;;  %s70_s12 = smov 122  }
   0x3   :  { %s71_s13 = smov 121  }
   0x9   :  { %v9_v1 = vld [vmem:[#allocation0] sm:$0x3]  }
   0xa   :  { %v21_v2 = vld [vmem:[#allocation0] sm:$0x3]   ;;  %10 = vrot.lane.b32.xlu0 %v9_v1, %s65_s0 }
   0xb   :  { %22 = vrot.lane.b32.xlu1 %v21_v2, %s66_s8  ;;  %v33_v3 = vld [vmem:[#allocation0] sm:$0x3]  }
   0xc   :  { %34 = vrot.lane.b32.xlu2 %v33_v3, %s67_s9  ;;  %v15_v4 = vld [vmem:[#allocation0] sm:$0x3]  }
   0xd   :  { %v27_v5 = vld [vmem:[#allocation0] sm:$0x3]  }
   0xe   :  { %v39_v6 = vld [vmem:[#allocation0] sm:$0x3]  }
   0xf   :  { %v45_v7 = vld [vmem:[#allocation0] sm:$0x3]  }
  0x10   :  { %v6_v8 = vld [vmem:[#allocation0] sm:$0x3]  }
  0x11   :  { %8 = vst.msk [vmem:[%s118_s1] ss:$8 sm:$0x3] %vm7_vm0, %v6_v8  }
  0x12   :  { %16 = vrot.lane.b32.xlu0 %v15_v4, %s68_s10 }
  0x13   :  { %28 = vrot.lane.b32.xlu1 %v27_v5, %s69_s11 }
  0x14   :  { %40 = vrot.lane.b32.xlu2 %v39_v6, %s70_s12 }
  0x1a   :  { %46 = vrot.lane.b32.xlu0 %v45_v7, %s71_s13 }
  0x66   :  { %v35_v9 = vpop.permute.xlu2 %34  }
  0x67   :  { %55 = vst.msk [vmem:[%s118_s1 + $0x5] ss:$8 sm:$0x3] %vm7_vm0, %v35_v9  }
  0x6e   :  { %v41_v10 = vpop.permute.xlu2 %40  }
  0x6f   :  { %56 = vst.msk [vmem:[%s118_s1 + $0x6] ss:$8 sm:$0x3] %vm7_vm0, %v41_v10  }
  0x7c   :  { %v11_v11 = vpop.permute.xlu0 %10  }
  0x7d   :  { %v23_v12 = vpop.permute.xlu1 %22   ;;  %51 = vst.msk [vmem:[%s118_s1 + $0x1] ss:$8 sm:$0x3] %vm7_vm0, %v11_v11  }
  0x7e   :  { %53 = vst.msk [vmem:[%s118_s1 + $0x3] ss:$8 sm:$0x3] %vm7_vm0, %v23_v12  }
  0x84   :  { %v17_v13 = vpop.permute.xlu0 %16  }
  0x85   :  { %v29_v14 = vpop.permute.xlu1 %28   ;;  %52 = vst.msk [vmem:[%s118_s1 + $0x2] ss:$8 sm:$0x3] %vm7_vm0, %v17_v13  }
  0x86   :  { %54 = vst.msk [vmem:[%s118_s1 + $0x4] ss:$8 sm:$0x3] %vm7_vm0, %v29_v14  }
  0x8c   :  { %v47_v15 = vpop.permute.xlu0 %46  }
  0x8d   :  { %57 = vst.msk [vmem:[%s118_s1 + $0x7] ss:$8 sm:$0x3] %vm7_vm0, %v47_v15  }

// kernel: separable_conv2d_bn.1
= control target key start
LH: loop header
LB: loop body
LE: loop exit
PB: predicated region body
PF: predicated region fallthrough
CT: control target
= control target key end

     0   :  { %v490_v2 = vmov 3   ;;  %v491_v3 = vmov 1   ;;  %s492_s19 = smov 127   ;;  %v493_v5 = vmov 4   ;;  %s494_s24 = smov 126   ;;  %v495_v7 = vmov 2   ;;  %s804_s0 = inlined_call_operand.vmem [shape: f32[1,8,420], index: 0, kind: input, shape index: {}]   ;;  %s805_s1 = inlined_call_operand.vmem [shape: f32[8,9], index: 1, kind: input, shape index: {}]   ;;  %s806_s2 = inlined_call_operand.vmem [shape: f32[16,8], index: 2, kind: input, shape index: {}]   ;;  %s807_s3 = inlined_call_operand.vmem [shape: f32[16,1], index: 3, kind: input, shape index: {}]   ;;  %s808_s4 = inlined_call_operand.vmem [shape: f32[1,16,384], index: 4, kind: output, shape index: {}]  }
   0x1   :  { %v531_v0 = vld [vmem:[%s804_s0 + $0x8] sm:$0xff]  ;;  %v536_v1 = vld [vmem:[%s804_s0] sm:$0xff]  ;;  %465 = vset.pattern.permute.xlu0 %v490_v2  ;;  %463 = vset.pattern.permute.xlu2 %v491_v3  ;;  %v551_v6 = vld [vmem:[%s804_s0 + $0x10] sm:$0xff]  ;;  %v497_v8 = vmov 6   ;;  %v498_v9 = vmov 5   ;;  %s499_s27 = smov 92   ;;  %v36_v15 = vlaneseq }
   0x2   :  { %32 = vrot.lane.b32.xlu1 %v531_v0, %s492_s19  ;;  %30 = vrot.lane.b32.xlu0 %v536_v1, %s492_s19  ;;  %v21_v4 = vld [vmem:[%s805_s1] sm:$0xff]  ;;  %s496_s1 = smov 110   ;;  %v573_v10 = vld [vmem:[%s804_s0 + $0x18] sm:$0xff]  ;;  %v500_v11 = vmov 0   ;;  %v501_v12 = vmov 7   ;;  %v502_v13 = vmov 8  }
   0x3   :  { %43 = vperm.xlu2 %463, %v21_v4   ;;  %466 = vset.pattern.permute.xlu1 %v493_v5  ;;  %v587_v16 = vand.u32 127, %v36_v15  ;;  %vm92_vm2 = vcmask 900096   ;;  %vm178_vm3 = vcmask 752640  }
   0x5   :  { %vm38_vm0 = vcmp.lt.s32.totalorder %v587_v16, 127  ;;  %vm58_vm1 = vcmp.lt.s32.totalorder %v587_v16, 126 }
   0xa   :  { %34 = vrot.lane.b32.xlu1 %v551_v6, %s492_s19  ;;  %54 = vrot.lane.b32.xlu0 %v531_v0, %s494_s24 }
   0xb   :  { %52 = vrot.lane.b32.xlu2 %v536_v1, %s494_s24 }
   0xc   :  { %464 = vset.pattern.permute.xlu2 %v495_v7 }
  0x12   :  { %56 = vrot.lane.b32.xlu1 %v551_v6, %s494_s24  ;;  %73 = vperm.xlu0 %465, %v21_v4  }
  0x13   :  { %63 = vperm.xlu2 %464, %v21_v4  }
  0x1a   :  { %108 = vrot.lane.b32.xlu1 %v531_v0, %s496_s1  ;;  %106 = vrot.lane.b32.xlu0 %v536_v1, %s496_s1 }
  0x1b   :  { %468 = vset.pattern.permute.xlu0 %v497_v8  ;;  %110 = vrot.lane.b32.xlu2 %v551_v6, %s496_s1 }
  0x1c   :  { %467 = vset.pattern.permute.xlu2 %v498_v9 }
  0x22   :  { %112 = vrot.lane.b32.xlu0 %v573_v10, %s496_s1  ;;  %130 = vperm.xlu1 %466, %v21_v4  }
  0x23   :  { %149 = vperm.xlu2 %467, %v21_v4  }
  0x2a   :  { %159 = vperm.xlu0 %468, %v21_v4   ;;  %190 = vrot.lane.b32.xlu1 %v531_v0, %s499_s27 }
  0x2b   :  { %192 = vrot.lane.b32.xlu2 %v551_v6, %s499_s27  ;;  %470 = vset.pattern.permute.xlu1 %v501_v12 }
  0x2c   :  { %471 = vset.pattern.permute.xlu2 %v502_v13 }
  0x32   :  { %469 = vset.pattern.permute.xlu0 %v500_v11  ;;  %212 = vperm.xlu1 %470, %v21_v4  }
  0x33   :  { %24 = vperm.xlu0 %469, %v21_v4   ;;  %231 = vperm.xlu2 %471, %v21_v4  }
  0x3a   :  { %472 = vset.pattern.permute.xlu1 %v500_v11 }
  0x3b   :  { %188 = vrot.lane.b32.xlu0 %v536_v1, %s499_s27  ;;  %473 = vset.pattern.permute.xlu2 %v491_v3 }
  0x43   :  { %194 = vrot.lane.b32.xlu0 %v573_v10, %s499_s27 }
  0x5d   :  { %v44_v14 = vpop.permute.xlu2 %43 }
  0x65   :  { %v53_v17 = vpop.permute.xlu2 %52 }
  0x6d   :  { %v64_v22 = vpop.permute.xlu2 %63 }
  0x74   :  { %v33_v18 = vpop.permute.xlu1 %32  ;;  %v31_v19 = vpop.permute.xlu0 %30 }
  0x75   :  { %v40_v20 = vsel %vm38_vm0, %v31_v19, %v33_v18  ;;  %v111_v37 = vpop.permute.xlu2 %110 }
  0x76   :  { %v46_v21 = vmul.f32 %v44_v14, %v40_v20 }
  0x7c   :  { %v35_v23 = vpop.permute.xlu1 %34  ;;  %v55_v24 = vpop.permute.xlu0 %54 }
  0x7d   :  { %v39_v25 = vsel %vm38_vm0, %v33_v18, %v35_v23  ;;  %v41_v26 = vsel %vm38_vm0, %v35_v23, %v31_v19  ;;  %v60_v27 = vsel %vm58_vm1, %v53_v17, %v55_v24  ;;  %v609_v42 = vpop.permute.xlu2 %149  ;;  %v240_v18 = vld [vmem:[%s806_s2] sm:$0xff]  ;;  %v423_v23 = vld [vmem:[%s807_s3 + $0x8] sm:$0xff] }
  0x7e   :  { %v47_v28 = vmul.f32 %v44_v14, %v39_v25  ;;  %v48_v29 = vmul.f32 %v44_v14, %v41_v26  ;;  %v66_v30 = vmul.f32 %v64_v22, %v60_v27 }
  0x84   :  { %v57_v31 = vpop.permute.xlu1 %56  ;;  %v74_v32 = vpop.permute.xlu0 %73 }
  0x85   :  { %v59_v33 = vsel %vm58_vm1, %v55_v24, %v57_v31  ;;  %v61_v34 = vsel %vm58_vm1, %v57_v31, %v53_v17  ;;  %v193_v46 = vpop.permute.xlu2 %192  ;;  %v77_v63 = vmul.f32 %v74_v32, %v531_v0  ;;  %v79_v13 = vmul.f32 %v74_v32, %v573_v10 }
  0x86   :  { %v67_v35 = vmul.f32 %v64_v22, %v59_v33  ;;  %v68_v36 = vmul.f32 %v64_v22, %v61_v34  ;;  %v76_v14 = vmul.f32 %v74_v32, %v536_v1  ;;  %v78_v17 = vmul.f32 %v74_v32, %v551_v6 }
  0x8c   :  { %v109_v38 = vpop.permute.xlu1 %108  ;;  %v107_v39 = vpop.permute.xlu0 %106 }
  0x8d   :  { %v115_v40 = vsel %vm92_vm2, %v109_v38, %v111_v37  ;;  %v114_v41 = vsel %vm92_vm2, %v107_v39, %v109_v38 }
  0x8e   :  { %122 = vrot.lane.b32.xlu2 %v115_v40, %s492_s19  ;;  %120 = vrot.lane.b32.xlu1 %v114_v41, %s492_s19 }
  0x94   :  { %v113_v43 = vpop.permute.xlu0 %112  ;;  %v611_v44 = vpop.permute.xlu1 %130 }
  0x95   :  { %v116_v45 = vsel %vm92_vm2, %v111_v37, %v113_v43 }
  0x96   :  { %139 = vrot.lane.b32.xlu2 %v114_v41, %s494_s24  ;;  %143 = vrot.lane.b32.xlu1 %v116_v45, %s494_s24 }
  0x97   :  { %124 = vrot.lane.b32.xlu0 %v116_v45, %s492_s19 }
  0x9c   :  { %v160_v47 = vpop.permute.xlu0 %159  ;;  %v191_v48 = vpop.permute.xlu1 %190 }
  0x9d   :  { %v197_v49 = vsel %vm178_vm3, %v191_v48, %v193_v46  ;;  %v163_v15 = vmul.f32 %v160_v47, %v531_v0  ;;  %v165_v19 = vmul.f32 %v160_v47, %v573_v10  ;;  %v162_v20 = vmul.f32 %v160_v47, %v536_v1 }
  0x9e   :  { %204 = vrot.lane.b32.xlu2 %v197_v49, %s492_s19 }
  0x9f   :  { %141 = vrot.lane.b32.xlu0 %v115_v40, %s494_s24 }
  0xa5   :  { %v25_v50 = vpop.permute.xlu0 %24 }
  0xa6   :  { %v27_v51 = vmul.f32 %v25_v50, %v536_v1  ;;  %v28_v52 = vmul.f32 %v25_v50, %v531_v0  ;;  %v29_v53 = vmul.f32 %v25_v50, %v551_v6  ;;  %v164_v0 = vmul.f32 %v160_v47, %v551_v6  ;;  %v667_v1 = vpop.permute.xlu2 %231  ;;  %v213_v6 = vpop.permute.xlu1 %212 }
  0xa8   :  { %v49_v54 = vadd.f32 %v46_v21, %v27_v51  ;;  %v50_v55 = vadd.f32 %v47_v28, %v28_v52  ;;  %v51_v56 = vadd.f32 %v48_v29, %v29_v53  ;;  %v241_v21 = vld [vmem:[%s806_s2 + $0x8] sm:$0xff] }
  0xaa   :  { %v623_v57 = vadd.f32 %v66_v30, %v49_v54  ;;  %v625_v58 = vadd.f32 %v67_v35, %v50_v55  ;;  %v627_v59 = vadd.f32 %v68_v36, %v51_v56 }
  0xad   :  { %v189_v60 = vpop.permute.xlu0 %188 }
  0xae   :  { %v196_v61 = vsel %vm178_vm3, %v189_v60, %v191_v48 }
  0xaf   :  { %221 = vrot.lane.b32.xlu2 %v196_v61, %s494_s24  ;;  %202 = vrot.lane.b32.xlu1 %v196_v61, %s492_s19 }
  0xb5   :  { %v195_v62 = vpop.permute.xlu0 %194 }
  0xb6   :  { %v198_v4 = vsel %vm178_vm3, %v193_v46, %v195_v62 }
  0xb7   :  { %86 = vrot.lane.b32.xlu2 %v77_v63, %s496_s1  ;;  %225 = vrot.lane.b32.xlu1 %v198_v4, %s494_s24 }
  0xb8   :  { %206 = vrot.lane.b32.xlu0 %v198_v4, %s492_s19 }
  0xbf   :  { %90 = vrot.lane.b32.xlu2 %v79_v13, %s496_s1  ;;  %84 = vrot.lane.b32.xlu1 %v76_v14, %s496_s1 }
  0xc0   :  { %223 = vrot.lane.b32.xlu0 %v197_v49, %s494_s24 }
  0xc7   :  { %172 = vrot.lane.b32.xlu2 %v163_v15, %s499_s27  ;;  %88 = vrot.lane.b32.xlu1 %v78_v17, %s496_s1 }
  0xc8   :  { %244 = vperm.xlu0 %469, %v240_v18  }
  0xcf   :  { %176 = vrot.lane.b32.xlu2 %v165_v19, %s499_s27  ;;  %170 = vrot.lane.b32.xlu1 %v162_v20, %s499_s27 }
  0xd0   :  { %476 = vset.pattern.permute.xlu0 %v495_v7 }
  0xd1   :  { %289 = vperm.xlu0 %476, %v241_v21  }
  0xd7   :  { %262 = vperm.xlu2 %473, %v240_v18   ;;  %174 = vrot.lane.b32.xlu1 %v164_v0, %s499_s27 }
  0xd9   :  { %481 = vset.pattern.permute.xlu0 %v498_v9 }
  0xda   :  { %354 = vperm.xlu0 %481, %v240_v18  }
  0xdf   :  { %475 = vset.pattern.permute.xlu2 %v495_v7  ;;  %249 = vperm.xlu1 %472, %v241_v21  }
  0xe0   :  { %285 = vperm.xlu2 %475, %v240_v18  }
  0xe2   :  { %486 = vset.pattern.permute.xlu0 %v501_v12 }
  0xe3   :  { %404 = vperm.xlu0 %486, %v241_v21  }
  0xe7   :  { %474 = vset.pattern.permute.xlu1 %v491_v3 }
  0xe8   :  { %478 = vset.pattern.permute.xlu2 %v490_v2  ;;  %266 = vperm.xlu1 %474, %v241_v21   ;;  %v123_v3 = vpop.permute.xlu2 %122 }
  0xe9   :  { %312 = vperm.xlu2 %478, %v241_v21  }
  0xeb   :  { %489 = vset.pattern.permute.xlu0 %v500_v11 }
  0xf0   :  { %477 = vset.pattern.permute.xlu1 %v490_v2  ;;  %v140_v2 = vpop.permute.xlu2 %139 }
  0xf1   :  { %480 = vset.pattern.permute.xlu2 %v493_v5  ;;  %308 = vperm.xlu1 %477, %v240_v18  }
  0xf2   :  { %335 = vperm.xlu2 %480, %v241_v21  }
  0xf9   :  { %479 = vset.pattern.permute.xlu1 %v493_v5 }
  0xfa   :  { %483 = vset.pattern.permute.xlu2 %v497_v8  ;;  %331 = vperm.xlu1 %479, %v240_v18  }
  0xfb   :  { %377 = vperm.xlu2 %483, %v240_v18  }
 0x100   :  { %v121_v7 = vpop.permute.xlu1 %120 }
 0x101   :  { %v127_v10 = vsel %vm38_vm0, %v121_v7, %v123_v3 }
 0x102   :  { %482 = vset.pattern.permute.xlu1 %v498_v9  ;;  %v205_v9 = vpop.permute.xlu2 %204  ;;  %v133_v40 = vmul.f32 %v611_v44, %v127_v10 }
 0x103   :  { %485 = vset.pattern.permute.xlu2 %v501_v12  ;;  %358 = vperm.xlu1 %482, %v241_v21   ;;  %v422_v12 = vld [vmem:[%s807_s3] sm:$0xff] }
 0x104   :  { %400 = vperm.xlu2 %485, %v240_v18  }
 0x108   :  { %v144_v22 = vpop.permute.xlu1 %143 }
 0x109   :  { %v147_v5 = vsel %vm58_vm1, %v144_v22, %v140_v2  ;;  %v125_v24 = vpop.permute.xlu0 %124 }
 0x10a   :  { %v222_v25 = vpop.permute.xlu2 %221  ;;  %v126_v48 = vsel %vm38_vm0, %v123_v3, %v125_v24  ;;  %v128_v49 = vsel %vm38_vm0, %v125_v24, %v121_v7  ;;  %v154_v60 = vmul.f32 %v609_v42, %v147_v5 }
 0x10b   :  { %484 = vset.pattern.permute.xlu1 %v497_v8  ;;  %v134_v54 = vmul.f32 %v611_v44, %v126_v48  ;;  %v135_v55 = vmul.f32 %v611_v44, %v128_v49 }
 0x10c   :  { %381 = vperm.xlu1 %484, %v241_v21   ;;  %488 = vset.pattern.permute.xlu2 %v500_v11 }
 0x10d   :  { %431 = vperm.xlu2 %488, %v423_v23  }
 0x111   :  { %v142_v8 = vpop.permute.xlu0 %141 }
 0x112   :  { %v87_v27 = vpop.permute.xlu2 %86  ;;  %v146_v38 = vsel %vm58_vm1, %v140_v2, %v142_v8  ;;  %v145_v51 = vsel %vm58_vm1, %v142_v8, %v144_v22 }
 0x113   :  { %v152_v43 = vmul.f32 %v609_v42, %v146_v38  ;;  %v153_v61 = vmul.f32 %v609_v42, %v145_v51 }
 0x114   :  { %487 = vset.pattern.permute.xlu1 %v500_v11 }
 0x115   :  { %426 = vperm.xlu1 %487, %v422_v12  }
 0x11a   :  { %v91_v34 = vpop.permute.xlu2 %90 }
 0x121   :  { %v203_v26 = vpop.permute.xlu1 %202 }
 0x122   :  { %v209_v28 = vsel %vm38_vm0, %v203_v26, %v205_v9  ;;  %v173_v46 = vpop.permute.xlu2 %172 }
 0x123   :  { %v215_v29 = vmul.f32 %v213_v6, %v209_v28 }
 0x129   :  { %v226_v30 = vpop.permute.xlu1 %225 }
 0x12a   :  { %v229_v31 = vsel %vm58_vm1, %v226_v30, %v222_v25  ;;  %v207_v32 = vpop.permute.xlu0 %206  ;;  %v177_v15 = vpop.permute.xlu2 %176 }
 0x12b   :  { %v208_v33 = vsel %vm38_vm0, %v205_v9, %v207_v32  ;;  %v210_v11 = vsel %vm38_vm0, %v207_v32, %v203_v26  ;;  %v236_v5 = vmul.f32 %v667_v1, %v229_v31 }
 0x12c   :  { %v216_v35 = vmul.f32 %v213_v6, %v208_v33  ;;  %v217_v36 = vmul.f32 %v213_v6, %v210_v11 }
 0x131   :  { %v85_v37 = vpop.permute.xlu1 %84 }
 0x132   :  { %v93_v39 = vsel %vm92_vm2, %v85_v37, %v87_v27  ;;  %v224_v4 = vpop.permute.xlu0 %223  ;;  %v263_v21 = vpop.permute.xlu2 %262 }
 0x133   :  { %v99_v41 = vadd.f32 %v93_v39, %v623_v57  ;;  %v228_v18 = vsel %vm58_vm1, %v222_v25, %v224_v4  ;;  %v227_v0 = vsel %vm58_vm1, %v224_v4, %v226_v30 }
 0x134   :  { %v235_v2 = vmul.f32 %v667_v1, %v227_v0 }
 0x135   :  { %v136_v45 = vadd.f32 %v133_v40, %v99_v41 }
 0x137   :  { %v155_v47 = vadd.f32 %v152_v43, %v136_v45 }
 0x139   :  { %v89_v50 = vpop.permute.xlu1 %88 }
 0x13a   :  { %v94_v52 = vsel %vm92_vm2, %v87_v27, %v89_v50  ;;  %v95_v53 = vsel %vm92_vm2, %v89_v50, %v91_v34  ;;  %v286_v25 = vpop.permute.xlu2 %285  ;;  %v245_v16 = vpop.permute.xlu0 %244 }
 0x13b   :  { %v100_v56 = vadd.f32 %v94_v52, %v625_v58  ;;  %v101_v57 = vadd.f32 %v95_v53, %v627_v59  ;;  %v234_v58 = vmul.f32 %v667_v1, %v228_v18 }
 0x13d   :  { %v137_v62 = vadd.f32 %v134_v54, %v100_v56  ;;  %v138_v63 = vadd.f32 %v135_v55, %v101_v57 }
 0x13f   :  { %v156_v13 = vadd.f32 %v153_v61, %v137_v62  ;;  %v157_v14 = vadd.f32 %v154_v60, %v138_v63 }
 0x141   :  { %v171_v17 = vpop.permute.xlu1 %170 }
 0x142   :  { %v179_v44 = vsel %vm178_vm3, %v171_v17, %v173_v46 }
 0x143   :  { %v185_v19 = vadd.f32 %v179_v44, %v155_v47  ;;  %v730_v8 = vpop.permute.xlu2 %312  ;;  %v290_v27 = vpop.permute.xlu0 %289 }
 0x145   :  { %v218_v59 = vadd.f32 %v215_v29, %v185_v19 }
 0x147   :  { %v718_v20 = vadd.f32 %v234_v58, %v218_v59 }
 0x149   :  { %v175_v42 = vpop.permute.xlu1 %174  ;;  %v292_v30 = vperm.slane %v718_v20, 2  ;;  %v315_v32 = vperm.slane %v718_v20, 3  ;;  %v252_v1 = vperm.slane %v718_v20, 0  ;;  %v269_v31 = vperm.slane %v718_v20, 1 }
 0x14a   :  { %v180_v6 = vsel %vm178_vm3, %v173_v46, %v175_v42  ;;  %v181_v3 = vsel %vm178_vm3, %v175_v42, %v177_v15  ;;  %v361_v34 = vperm.slane %v718_v20, 5  ;;  %v407_v41 = vperm.slane %v718_v20, 7 }
 0x14b   :  { %v186_v7 = vadd.f32 %v180_v6, %v156_v13  ;;  %v187_v10 = vadd.f32 %v181_v3, %v157_v14  ;;  %v295_v38 = vmul.f32 %v292_v30, %v286_v25  ;;  %v298_v39 = vmul.f32 %v292_v30, %v290_v27 }
 0x14c   :  { %v732_v29 = vpop.permute.xlu2 %335  ;;  %v321_v40 = vmul.f32 %v315_v32, %v730_v8  ;;  %v746_v43 = vpop.permute.xlu0 %354  ;;  %v255_v45 = vmul.f32 %v252_v1, %v245_v16  ;;  %v272_v46 = vmul.f32 %v269_v31, %v263_v21  ;;  %v384_v62 = vperm.slane %v718_v20, 6 }
 0x14d   :  { %v219_v22 = vadd.f32 %v216_v35, %v186_v7  ;;  %v220_v23 = vadd.f32 %v217_v36, %v187_v10  ;;  %v338_v35 = vperm.slane %v718_v20, 4  ;;  %v364_v60 = vmul.f32 %v361_v34, %v746_v43 }
 0x14e   :  { %v278_v17 = vadd.f32 %v272_v46, %v255_v45 }
 0x14f   :  { %v726_v9 = vadd.f32 %v235_v2, %v219_v22  ;;  %v728_v12 = vadd.f32 %v236_v5, %v220_v23  ;;  %v344_v4 = vmul.f32 %v338_v35, %v732_v29 }
 0x151   :  { %v250_v24 = vpop.permute.xlu1 %249  ;;  %v253_v33 = vperm.slane %v726_v9, 0  ;;  %v270_v11 = vperm.slane %v726_v9, 1  ;;  %v254_v36 = vperm.slane %v728_v12, 0  ;;  %v271_v37 = vperm.slane %v728_v12, 1 }
 0x152   :  { %v258_v51 = vmul.f32 %v252_v1, %v250_v24  ;;  %v293_v57 = vperm.slane %v726_v9, 2  ;;  %v294_v63 = vperm.slane %v728_v12, 2  ;;  %v339_v18 = vperm.slane %v726_v9, 4 }
 0x153   :  { %v256_v50 = vmul.f32 %v253_v33, %v245_v16  ;;  %v273_v52 = vmul.f32 %v270_v11, %v263_v21  ;;  %v257_v54 = vmul.f32 %v254_v36, %v245_v16  ;;  %v259_v55 = vmul.f32 %v253_v33, %v250_v24 }
 0x154   :  { %v274_v56 = vmul.f32 %v271_v37, %v263_v21  ;;  %v260_v61 = vmul.f32 %v254_v36, %v250_v24  ;;  %v340_v44 = vperm.slane %v728_v12, 4  ;;  %v299_v59 = vmul.f32 %v293_v57, %v290_v27 }
 0x155   :  { %v755_v13 = vpop.permute.xlu2 %377  ;;  %v279_v58 = vadd.f32 %v273_v52, %v256_v50  ;;  %v316_v42 = vperm.slane %v726_v9, 3  ;;  %v317_v0 = vperm.slane %v728_v12, 3  ;;  %v300_v6 = vmul.f32 %v294_v63, %v290_v27  ;;  %v405_v50 = vpop.permute.xlu0 %404 }
 0x156   :  { %v280_v21 = vadd.f32 %v274_v56, %v257_v54  ;;  %v296_v3 = vmul.f32 %v293_v57, %v286_v25  ;;  %v297_v7 = vmul.f32 %v294_v63, %v286_v25  ;;  %v301_v16 = vadd.f32 %v295_v38, %v278_v17 }
 0x157   :  { %v322_v33 = vmul.f32 %v316_v42, %v730_v8  ;;  %v363_v27 = vperm.slane %v728_v12, 5  ;;  %v323_v25 = vmul.f32 %v317_v0, %v730_v8  ;;  %v345_v38 = vmul.f32 %v339_v18, %v732_v29 }
 0x158   :  { %v409_v57 = vperm.slane %v728_v12, 7  ;;  %v386_v17 = vperm.slane %v728_v12, 6 }
 0x15a   :  { %v267_v26 = vpop.permute.xlu1 %266 }
 0x15b   :  { %v275_v47 = vmul.f32 %v269_v31, %v267_v26  ;;  %v276_v48 = vmul.f32 %v270_v11, %v267_v26  ;;  %v277_v53 = vmul.f32 %v271_v37, %v267_v26  ;;  %v302_v26 = vadd.f32 %v296_v3, %v279_v58 }
 0x15c   :  { %v303_v31 = vadd.f32 %v297_v7, %v280_v21  ;;  %v362_v37 = vperm.slane %v726_v9, 5 }
 0x15d   :  { %v281_v14 = vadd.f32 %v275_v47, %v258_v51  ;;  %v282_v15 = vadd.f32 %v276_v48, %v259_v55  ;;  %v283_v19 = vadd.f32 %v277_v53, %v260_v61  ;;  %v366_v55 = vmul.f32 %v363_v27, %v746_v43 }
 0x15e   :  { %v401_v51 = vpop.permute.xlu2 %400  ;;  %v365_v8 = vmul.f32 %v362_v37, %v746_v43  ;;  %v385_v61 = vperm.slane %v726_v9, 6 }
 0x15f   :  { %v304_v2 = vadd.f32 %v298_v39, %v281_v14  ;;  %v305_v22 = vadd.f32 %v299_v59, %v282_v15  ;;  %v306_v24 = vadd.f32 %v300_v6, %v283_v19  ;;  %v413_v15 = vmul.f32 %v407_v41, %v405_v50 }
 0x160   :  { %v388_v12 = vmul.f32 %v385_v61, %v755_v13  ;;  %v415_v6 = vmul.f32 %v409_v57, %v405_v50 }
 0x161   :  { %v328_v46 = vadd.f32 %v322_v33, %v305_v22  ;;  %v329_v48 = vadd.f32 %v323_v25, %v306_v24 }
 0x163   :  { %v309_v28 = vpop.permute.xlu1 %308  ;;  %v351_v14 = vadd.f32 %v345_v38, %v328_v46 }
 0x164   :  { %v318_v10 = vmul.f32 %v315_v32, %v309_v28  ;;  %v319_v5 = vmul.f32 %v316_v42, %v309_v28  ;;  %v320_v23 = vmul.f32 %v317_v0, %v309_v28  ;;  %v327_v28 = vadd.f32 %v321_v40, %v304_v2 }
 0x165   :  { %v346_v40 = vmul.f32 %v340_v44, %v732_v29  ;;  %v387_v0 = vmul.f32 %v384_v62, %v755_v13 }
 0x166   :  { %v324_v32 = vadd.f32 %v318_v10, %v301_v16  ;;  %v325_v39 = vadd.f32 %v319_v5, %v302_v26  ;;  %v326_v45 = vadd.f32 %v320_v23, %v303_v31  ;;  %v350_v63 = vadd.f32 %v344_v4, %v327_v28 }
 0x167   :  { %v432_v2 = vpop.permute.xlu2 %431 }
 0x16c   :  { %v332_v49 = vpop.permute.xlu1 %331 }
 0x16d   :  { %v341_v30 = vmul.f32 %v338_v35, %v332_v49  ;;  %v342_v11 = vmul.f32 %v339_v18, %v332_v49  ;;  %v343_v36 = vmul.f32 %v340_v44, %v332_v49  ;;  %v408_v35 = vperm.slane %v726_v9, 7 }
 0x16e   :  { %v352_v18 = vadd.f32 %v346_v40, %v329_v48 }
 0x16f   :  { %v347_v47 = vadd.f32 %v341_v30, %v324_v32  ;;  %v348_v49 = vadd.f32 %v342_v11, %v325_v39  ;;  %v349_v52 = vadd.f32 %v343_v36, %v326_v45  ;;  %v414_v4 = vmul.f32 %v408_v35, %v405_v50 }
 0x170   :  { %v410_v30 = vmul.f32 %v407_v41, %v401_v51 }
 0x171   :  { %v371_v19 = vadd.f32 %v365_v8, %v348_v49  ;;  %v372_v58 = vadd.f32 %v366_v55, %v349_v52 }
 0x173   :  { %v394_v5 = vadd.f32 %v388_v12, %v371_v19 }
 0x175   :  { %v359_v1 = vpop.permute.xlu1 %358 }
 0x176   :  { %v367_v53 = vmul.f32 %v361_v34, %v359_v1  ;;  %v368_v54 = vmul.f32 %v362_v37, %v359_v1  ;;  %v369_v56 = vmul.f32 %v363_v27, %v359_v1  ;;  %v370_v34 = vadd.f32 %v364_v60, %v347_v47 }
 0x177   :  { %v389_v60 = vmul.f32 %v386_v17, %v755_v13  ;;  %v411_v1 = vmul.f32 %v408_v35, %v401_v51 }
 0x178   :  { %v373_v59 = vadd.f32 %v367_v53, %v350_v63  ;;  %v374_v43 = vadd.f32 %v368_v54, %v351_v14  ;;  %v375_v29 = vadd.f32 %v369_v56, %v352_v18  ;;  %v393_v22 = vadd.f32 %v387_v0, %v370_v34 }
 0x179   :  { %v395_v23 = vadd.f32 %v389_v60, %v372_v58  ;;  %v417_v36 = vadd.f32 %v411_v1, %v394_v5 }
 0x17a   :  { %v416_v13 = vadd.f32 %v410_v30, %v393_v22 }
 0x17e   :  { %v382_v21 = vpop.permute.xlu1 %381 }
 0x17f   :  { %v390_v44 = vmul.f32 %v384_v62, %v382_v21  ;;  %v391_v42 = vmul.f32 %v385_v61, %v382_v21  ;;  %v392_v9 = vmul.f32 %v386_v17, %v382_v21  ;;  %v412_v62 = vmul.f32 %v409_v57, %v401_v51 }
 0x181   :  { %v396_v3 = vadd.f32 %v390_v44, %v373_v59  ;;  %v397_v7 = vadd.f32 %v391_v42, %v374_v43  ;;  %v398_v10 = vadd.f32 %v392_v9, %v375_v29  ;;  %v418_v37 = vadd.f32 %v412_v62, %v395_v23 }
 0x183   :  { %v419_v24 = vadd.f32 %v413_v15, %v396_v3  ;;  %v420_v16 = vadd.f32 %v414_v4, %v397_v7  ;;  %v421_v26 = vadd.f32 %v415_v6, %v398_v10 }
 0x185   :  { %v437_v31 = vadd.f32 %v432_v2, %v419_v24  ;;  %v438_v33 = vadd.f32 %v432_v2, %v420_v16  ;;  %v439_v11 = vadd.f32 %v432_v2, %v421_v26 }
 0x187   :  { %443 = vst [vmem:[%s808_s4 + $0x18] sm:$0xff] %v437_v31  ;;  %v427_v27 = vpop.permute.xlu1 %426 }
 0x188   :  { %444 = vst [vmem:[%s808_s4 + $0x20] sm:$0xff] %v438_v33  ;;  %v434_v25 = vadd.f32 %v427_v27, %v416_v13  ;;  %v435_v20 = vadd.f32 %v427_v27, %v417_v36  ;;  %v436_v41 = vadd.f32 %v427_v27, %v418_v37 }
 0x189   :  { %445 = vst [vmem:[%s808_s4 + $0x28] sm:$0xff] %v439_v11 }
 0x18a   :  { %440 = vst [vmem:[%s808_s4] sm:$0xff] %v434_v25 }
 0x18b   :  { %441 = vst [vmem:[%s808_s4 + $0x8] sm:$0xff] %v435_v20 }
 0x18c   :  { %442 = vst [vmem:[%s808_s4 + $0x10] sm:$0xff] %v436_v41 }

</bundles_post_ra>
